<compile_context>
chip_gen: v5e
topology: v5e:2x2
jax: 0.10.0
libtpu: 0.0.40
codegen_flags: <defaults>
</compile_context>

<pallas_src>
import functools

import jax
import jax.numpy as jnp
from jax.experimental import pallas as pl
from jax.experimental.pallas import tpu as pltpu

_LANE = 128      # f32 lane width
_SUBLANE = 8     # f32 sublane width


def _round_up(x, m):
    return (x + m - 1) // m * m


def _fcn_kernel(*refs, n_hidden_layers, n_input):
    if n_hidden_layers > 0:
        (x_ref, w_in_ref, b_in_ref, wh_ref, bh_ref,
         w_heads_ref, b_heads_ref, out_ref) = refs
    else:
        x_ref, w_in_ref, b_in_ref, w_heads_ref, b_heads_ref, out_ref = refs
        wh_ref = bh_ref = None

    # Input layer: Linear(N_INPUT, H_PAD) + tanh.
    if n_input == 1:
        # K=1 contraction -> VPU broadcast-multiply (skips the MXU entirely).
        h = jnp.tanh(x_ref[...] * w_in_ref[...] + b_in_ref[...])
    else:
        h = jnp.tanh(
            jnp.dot(x_ref[...], w_in_ref[...], preferred_element_type=jnp.float32)
            + b_in_ref[...]
        )

    # Hidden stack: (N_LAYERS - 1) x [Linear(H_PAD, H_PAD) + tanh].
    # Static Python loop (small fixed depth) -> fully unrolled, static ref views.
    for layer in range(n_hidden_layers):
        h = jnp.tanh(
            jnp.dot(h, wh_ref[layer], preferred_element_type=jnp.float32)
            + bh_ref[layer]
        )

    # Fused output heads: one matmul, one lane-dense output store.
    out_ref[...] = (
        jnp.dot(h, w_heads_ref[...], preferred_element_type=jnp.float32)
        + b_heads_ref[...]
    )


def pack_fcn_params(params):
    """Pads hidden width to a lane multiple and fuses the two heads."""
    w_in, b_in = params["w_in"], params["b_in"]
    wh, bh = params["wh"], params["bh"]
    w_prey, b_prey = params["w_prey"], params["b_prey"]
    w_pred, b_pred = params["w_pred"], params["b_pred"]

    n_in, n_hidden = w_in.shape
    n_out = w_prey.shape[1]
    n_hidden_layers = wh.shape[0]

    h_pad = _round_up(max(n_hidden, _LANE), _LANE)
    head_pad = _round_up(max(2 * n_out, _LANE), _LANE)

    def pad2(a, rows, cols):
        return jnp.pad(a, ((0, rows - a.shape[0]), (0, cols - a.shape[1])))

    w_in_p = pad2(w_in, n_in, h_pad)
    b_in_p = pad2(b_in, 1, h_pad)

    if n_hidden_layers > 0:
        wh_p = jnp.pad(wh, ((0, 0), (0, h_pad - n_hidden), (0, h_pad - n_hidden)))
        bh_p = jnp.pad(bh, ((0, 0), (0, 0), (0, h_pad - n_hidden)))
    else:
        wh_p = jnp.zeros((0, h_pad, h_pad), jnp.float32)
        bh_p = jnp.zeros((0, 1, h_pad), jnp.float32)

    w_heads_p = pad2(jnp.concatenate([w_prey, w_pred], axis=1), h_pad, head_pad)
    b_heads_p = pad2(jnp.concatenate([b_prey, b_pred], axis=1), 1, head_pad)

    return {
        "w_in": w_in_p, "b_in": b_in_p,
        "wh": wh_p, "bh": bh_p,
        "w_heads": w_heads_p, "b_heads": b_heads_p,
        "n_out": n_out, "n_input": n_in,
    }


def fcn_forward(x, packed, *, tile_batch=512):
    """Runs the FCN forward pass as a single Pallas kernel over a batch grid.

    Returns (prey_output, predator_output), each (batch, N_OUTPUT).
    """
    batch, n_in = x.shape
    n_out = packed["n_out"]
    head_pad = packed["w_heads"].shape[1]
    n_hidden_layers = packed["wh"].shape[0]

    # Batch tile: a sublane multiple that divides the padded batch.
    tb = max(_SUBLANE, min(tile_batch, _round_up(batch, _SUBLANE)))
    tb = _round_up(tb, _SUBLANE)
    b_pad = _round_up(batch, tb)
    if b_pad != batch:
        x = jnp.pad(x, ((0, b_pad - batch), (0, 0)))

    grid = (b_pad // tb,)

    kernel = functools.partial(
        _fcn_kernel, n_hidden_layers=n_hidden_layers, n_input=n_in
    )

    def const(ndim):
        return lambda i: (0,) * ndim

    # Activations tile over batch; weights are whole-array and stay resident.
    in_specs = [
        pl.BlockSpec((tb, n_in), lambda i: (i, 0)),
        pl.BlockSpec(packed["w_in"].shape, const(2)),
        pl.BlockSpec(packed["b_in"].shape, const(2)),
    ]
    inputs = [x, packed["w_in"], packed["b_in"]]
    if n_hidden_layers > 0:
        in_specs += [
            pl.BlockSpec(packed["wh"].shape, const(3)),
            pl.BlockSpec(packed["bh"].shape, const(3)),
        ]
        inputs += [packed["wh"], packed["bh"]]
    in_specs += [
        pl.BlockSpec(packed["w_heads"].shape, const(2)),
        pl.BlockSpec(packed["b_heads"].shape, const(2)),
    ]
    inputs += [packed["w_heads"], packed["b_heads"]]

    out = pl.pallas_call(
        kernel,
        out_shape=jax.ShapeDtypeStruct((b_pad, head_pad), jnp.float32),
        grid=grid,
        in_specs=in_specs,
        out_specs=pl.BlockSpec((tb, head_pad), lambda i: (i, 0)),
        compiler_params=pltpu.CompilerParams(
            dimension_semantics=("parallel",),
            vmem_limit_bytes=64 << 20,
        ),
    )(*inputs)

    prey = out[:batch, :n_out]
    pred = out[:batch, n_out:2 * n_out]
    return prey, pred


def init_fcn_params(key, n_input, n_output, n_hidden, n_layers):
    """Deterministic init mimicking PyTorch nn.Linear default U(-1/sqrt(fan_in), ..)."""
    def linear(key, fan_in, fan_out):
        kw, kb = jax.random.split(key)
        bound = 1.0 / jnp.sqrt(jnp.float32(fan_in))
        w = jax.random.uniform(kw, (fan_in, fan_out), jnp.float32, -bound, bound)
        b = jax.random.uniform(kb, (1, fan_out), jnp.float32, -bound, bound)
        return w, b

    keys = jax.random.split(key, n_layers + 2)
    w_in, b_in = linear(keys[0], n_input, n_hidden)

    wh_list, bh_list = [], []
    for i in range(n_layers - 1):
        w, b = linear(keys[1 + i], n_hidden, n_hidden)
        wh_list.append(w)
        bh_list.append(b)
    wh = (jnp.stack(wh_list, axis=0) if wh_list
          else jnp.zeros((0, n_hidden, n_hidden), jnp.float32))
    bh = (jnp.stack(bh_list, axis=0) if bh_list
          else jnp.zeros((0, 1, n_hidden), jnp.float32))

    w_prey, b_prey = linear(keys[n_layers], n_hidden, n_output)
    w_pred, b_pred = linear(keys[n_layers + 1], n_hidden, n_output)

    return {
        "w_in": w_in, "b_in": b_in,
        "wh": wh, "bh": bh,
        "w_prey": w_prey, "b_prey": b_prey,
        "w_pred": w_pred, "b_pred": b_pred,
    }


def fcn_reference(x, params):
    """Pure-JAX reference of the same forward for a correctness check."""
    h = jnp.tanh(x @ params["w_in"] + params["b_in"])
    for layer in range(params["wh"].shape[0]):
        h = jnp.tanh(h @ params["wh"][layer] + params["bh"][layer])
    prey = h @ params["w_prey"] + params["b_prey"]
    pred = h @ params["w_pred"] + params["b_pred"]
    return prey, pred


if __name__ == "__main__":
    # Shapes consistent with the PINN usage: x is (batch, N_INPUT) time samples.
    N_INPUT, N_OUTPUT, N_HIDDEN, N_LAYERS = 1, 1, 32, 3
    BATCH = 20  # deliberately not a tile multiple: exercises batch padding + grid

    key = jax.random.PRNGKey(0)
    k_params, k_x = jax.random.split(key)

    params = init_fcn_params(k_params, N_INPUT, N_OUTPUT, N_HIDDEN, N_LAYERS)
    packed = pack_fcn_params(params)
    x = jax.random.uniform(k_x, (BATCH, N_INPUT), jnp.float32)

    # Small tile to exercise a multi-step ("parallel") batch grid even at this size.
    prey, pred = fcn_forward(x, packed, tile_batch=8)
    prey, pred = jax.block_until_ready((prey, pred))

    prey_ref, pred_ref = fcn_reference(x, params)
    assert prey.shape == (BATCH, N_OUTPUT) and pred.shape == (BATCH, N_OUTPUT)
    assert jnp.allclose(prey, prey_ref, atol=1e-5), "prey head mismatch"
    assert jnp.allclose(pred, pred_ref, atol=1e-5), "predator head mismatch"

    print("KERNEL_OK")
</pallas_src>

<mosaic_0001>
module attributes {stable_mosaic.version = 11 : i64} {
  func.func @_fcn_kernel(%arg0: i32, %arg1: memref<8x1xf32, #tpu.memory_space<vmem>>, %arg2: memref<1x128xf32, #tpu.memory_space<vmem>>, %arg3: memref<1x128xf32, #tpu.memory_space<vmem>>, %arg4: memref<2x128x128xf32, #tpu.memory_space<vmem>>, %arg5: memref<2x1x128xf32, #tpu.memory_space<vmem>>, %arg6: memref<128x128xf32, #tpu.memory_space<vmem>>, %arg7: memref<1x128xf32, #tpu.memory_space<vmem>>, %arg8: memref<8x128xf32, #tpu.memory_space<vmem>>) attributes {dimension_semantics = [#tpu.dimension_semantics<parallel>], iteration_bounds = array<i64: 3>, scalar_prefetch = 0 : i64, scratch_operands = 0 : i64, tpu.core_type = #tpu.core_type<tc>, window_params = [{transform_indices = @transform_0, window_bounds = array<i64: 8, 1>}, {pipeline_mode = #tpu.pipeline_mode<synchronous>, transform_indices = @transform_1, window_bounds = array<i64: 1, 128>}, {pipeline_mode = #tpu.pipeline_mode<synchronous>, transform_indices = @transform_2, window_bounds = array<i64: 1, 128>}, {pipeline_mode = #tpu.pipeline_mode<synchronous>, transform_indices = @transform_3, window_bounds = array<i64: 2, 128, 128>}, {pipeline_mode = #tpu.pipeline_mode<synchronous>, transform_indices = @transform_4, window_bounds = array<i64: 2, 1, 128>}, {pipeline_mode = #tpu.pipeline_mode<synchronous>, transform_indices = @transform_5, window_bounds = array<i64: 128, 128>}, {pipeline_mode = #tpu.pipeline_mode<synchronous>, transform_indices = @transform_6, window_bounds = array<i64: 1, 128>}, {transform_indices = @transform_7, window_bounds = array<i64: 8, 128>}]} {
    %c0 = arith.constant 0 : index
    %c0_0 = arith.constant 0 : index
    %0 = vector.load %arg1[%c0, %c0_0] : memref<8x1xf32, #tpu.memory_space<vmem>>, vector<8x1xf32>
    %c0_1 = arith.constant 0 : index
    %c0_2 = arith.constant 0 : index
    %1 = vector.load %arg2[%c0_1, %c0_2] : memref<1x128xf32, #tpu.memory_space<vmem>>, vector<1x128xf32>
    %2 = vector.broadcast %0 : vector<8x1xf32> to vector<8x128xf32>
    %3 = vector.broadcast %1 : vector<1x128xf32> to vector<8x128xf32>
    %4 = arith.mulf %2, %3 : vector<8x128xf32>
    %c0_3 = arith.constant 0 : index
    %c0_4 = arith.constant 0 : index
    %5 = vector.load %arg3[%c0_3, %c0_4] : memref<1x128xf32, #tpu.memory_space<vmem>>, vector<1x128xf32>
    %6 = vector.broadcast %5 : vector<1x128xf32> to vector<8x128xf32>
    %7 = arith.addf %4, %6 : vector<8x128xf32>
    %8 = math.tanh %7 : vector<8x128xf32>
    %c0_5 = arith.constant 0 : index
    %c0_6 = arith.constant 0 : index
    %c0_7 = arith.constant 0 : index
    %9 = vector.load %arg4[%c0_5, %c0_6, %c0_7] : memref<2x128x128xf32, #tpu.memory_space<vmem>>, vector<1x128x128xf32>
    %10 = vector.shape_cast %9 : vector<1x128x128xf32> to vector<128x128xf32>
    %cst = arith.constant dense<0.000000e+00> : vector<8x128xf32>
    %11 = tpu.matmul %8, %10, %cst {dimension_numbers = #tpu.dot_dimension_numbers<[1], [0], [0], [1], [0, 0, 1, 1], [], []>} : vector<8x128xf32>, vector<128x128xf32>, vector<8x128xf32> -> vector<8x128xf32>
    %c0_8 = arith.constant 0 : index
    %c0_9 = arith.constant 0 : index
    %c0_10 = arith.constant 0 : index
    %12 = vector.load %arg5[%c0_8, %c0_9, %c0_10] : memref<2x1x128xf32, #tpu.memory_space<vmem>>, vector<1x1x128xf32>
    %13 = vector.shape_cast %12 : vector<1x1x128xf32> to vector<1x128xf32>
    %14 = vector.broadcast %13 : vector<1x128xf32> to vector<8x128xf32>
    %15 = arith.addf %11, %14 : vector<8x128xf32>
    %16 = math.tanh %15 : vector<8x128xf32>
    %c1 = arith.constant 1 : index
    %c0_11 = arith.constant 0 : index
    %c0_12 = arith.constant 0 : index
    %17 = vector.load %arg4[%c1, %c0_11, %c0_12] : memref<2x128x128xf32, #tpu.memory_space<vmem>>, vector<1x128x128xf32>
    %18 = vector.shape_cast %17 : vector<1x128x128xf32> to vector<128x128xf32>
    %cst_13 = arith.constant dense<0.000000e+00> : vector<8x128xf32>
    %19 = tpu.matmul %16, %18, %cst_13 {dimension_numbers = #tpu.dot_dimension_numbers<[1], [0], [0], [1], [0, 0, 1, 1], [], []>} : vector<8x128xf32>, vector<128x128xf32>, vector<8x128xf32> -> vector<8x128xf32>
    %c1_14 = arith.constant 1 : index
    %c0_15 = arith.constant 0 : index
    %c0_16 = arith.constant 0 : index
    %20 = vector.load %arg5[%c1_14, %c0_15, %c0_16] : memref<2x1x128xf32, #tpu.memory_space<vmem>>, vector<1x1x128xf32>
    %21 = vector.shape_cast %20 : vector<1x1x128xf32> to vector<1x128xf32>
    %22 = vector.broadcast %21 : vector<1x128xf32> to vector<8x128xf32>
    %23 = arith.addf %19, %22 : vector<8x128xf32>
    %24 = math.tanh %23 : vector<8x128xf32>
    %c0_17 = arith.constant 0 : index
    %c0_18 = arith.constant 0 : index
    %25 = vector.load %arg6[%c0_17, %c0_18] : memref<128x128xf32, #tpu.memory_space<vmem>>, vector<128x128xf32>
    %cst_19 = arith.constant dense<0.000000e+00> : vector<8x128xf32>
    %26 = tpu.matmul %24, %25, %cst_19 {dimension_numbers = #tpu.dot_dimension_numbers<[1], [0], [0], [1], [0, 0, 1, 1], [], []>} : vector<8x128xf32>, vector<128x128xf32>, vector<8x128xf32> -> vector<8x128xf32>
    %c0_20 = arith.constant 0 : index
    %c0_21 = arith.constant 0 : index
    %27 = vector.load %arg7[%c0_20, %c0_21] : memref<1x128xf32, #tpu.memory_space<vmem>>, vector<1x128xf32>
    %28 = vector.broadcast %27 : vector<1x128xf32> to vector<8x128xf32>
    %29 = arith.addf %26, %28 : vector<8x128xf32>
    %c0_22 = arith.constant 0 : index
    %c0_23 = arith.constant 0 : index
    %30 = vector.load %arg8[%c0_22, %c0_23] : memref<8x128xf32, #tpu.memory_space<vmem>>, vector<8x128xf32>
    tpu.vector_store %arg8[%c0_22, %c0_23], %29 {strides = array<i32>} : memref<8x128xf32, #tpu.memory_space<vmem>>, vector<8x128xf32>,
    return
  }
  func.func @transform_0(%arg0: i32) -> (i32, i32) {
    %c0_i32 = arith.constant 0 : i32
    %c0_i32_0 = arith.constant 0 : i32
    return %arg0, %c0_i32 : i32, i32
  }
  func.func @transform_1(%arg0: i32) -> (i32, i32) {
    %c0_i32 = arith.constant 0 : i32
    %c0_i32_0 = arith.constant 0 : i32
    %c0_i32_1 = arith.constant 0 : i32
    return %c0_i32, %c0_i32_0 : i32, i32
  }
  func.func @transform_2(%arg0: i32) -> (i32, i32) {
    %c0_i32 = arith.constant 0 : i32
    %c0_i32_0 = arith.constant 0 : i32
    %c0_i32_1 = arith.constant 0 : i32
    return %c0_i32, %c0_i32_0 : i32, i32
  }
  func.func @transform_3(%arg0: i32) -> (i32, i32, i32) {
    %c0_i32 = arith.constant 0 : i32
    %c0_i32_0 = arith.constant 0 : i32
    %c0_i32_1 = arith.constant 0 : i32
    %c0_i32_2 = arith.constant 0 : i32
    return %c0_i32, %c0_i32_0, %c0_i32_1 : i32, i32, i32
  }
  func.func @transform_4(%arg0: i32) -> (i32, i32, i32) {
    %c0_i32 = arith.constant 0 : i32
    %c0_i32_0 = arith.constant 0 : i32
    %c0_i32_1 = arith.constant 0 : i32
    %c0_i32_2 = arith.constant 0 : i32
    return %c0_i32, %c0_i32_0, %c0_i32_1 : i32, i32, i32
  }
  func.func @transform_5(%arg0: i32) -> (i32, i32) {
    %c0_i32 = arith.constant 0 : i32
    %c0_i32_0 = arith.constant 0 : i32
    %c0_i32_1 = arith.constant 0 : i32
    return %c0_i32, %c0_i32_0 : i32, i32
  }
  func.func @transform_6(%arg0: i32) -> (i32, i32) {
    %c0_i32 = arith.constant 0 : i32
    %c0_i32_0 = arith.constant 0 : i32
    %c0_i32_1 = arith.constant 0 : i32
    return %c0_i32, %c0_i32_0 : i32, i32
  }
  func.func @transform_7(%arg0: i32) -> (i32, i32) {
    %c0_i32 = arith.constant 0 : i32
    %c0_i32_0 = arith.constant 0 : i32
    return %arg0, %c0_i32 : i32, i32
  }
}

</mosaic_0001>

<bundles_post_ra>
// kernel: tpu_custom_call.1
= control target key start
LH: loop header
LB: loop body
LE: loop exit
PB: predicated region body
PF: predicated region fallthrough
CT: control target
= control target key end

     0   :  { %12 = vsyncpa [#allocation3], 0  ;;  %s939_s0 = inlined_call_operand.vmem [shape: f32[24,1], index: 0, kind: input, shape index: {}]   ;;  %s940_s1 = inlined_call_operand.vmem [shape: f32[1,128], index: 1, kind: input, shape index: {}]   ;;  %s941_s2 = inlined_call_operand.vmem [shape: f32[1,128], index: 2, kind: input, shape index: {}]   ;;  %s942_s3 = inlined_call_operand.hbm [shape: f32[2,128,128], index: 3, kind: input, shape index: {}]   ;;  %s943_s4 = inlined_call_operand.vmem [shape: f32[2,1,128], index: 4, kind: input, shape index: {}]   ;;  %s944_s5 = inlined_call_operand.hbm [shape: f32[128,128], index: 5, kind: input, shape index: {}]   ;;  %s945_s6 = inlined_call_operand.vmem [shape: f32[1,128], index: 6, kind: input, shape index: {}]   ;;  %s946_s7 = inlined_call_operand.hbm [shape: f32[24,128], index: 7, kind: output, shape index: {}]  }
   0x1   :  { %13 = vsyncpa [#allocation6], 0 }
   0x2   :  { %14 = vsyncpa [#allocation4], 0 }
   0x3   :  { %16 = vsyncpa [#allocation4 + $0x1], 0  ;;  %s814_s24 = smov 0   ;;  %s816_s25 = smov 0  }
   0x4   :  { %s818_s26 = smov 0   ;;  %s820_s27 = smov 0  }
   0x5 LB: > { %s835_s28 = sadd.s32 4294967295, %s767_s27   ;;  %s547_s29 = sadd.s32 4294967294, %s767_s27   ;;  %s767_s27 = sphi %s820_s27, %s953_s27   ;;  %s763_s26 = sphi %s818_s26, %s952_s26   ;;  %s759_s25 = sphi %s816_s25, %s951_s25   ;;  %s755_s24 = sphi %s814_s24, %s950_s24  }
   0x6   : > { %s839_s30 = sadd.s32 1, %s767_s27   ;;  %s181_s8 = sadd.s32 1, %s763_s26 }
   0x7   : > { %s178_s9 = ssub.s32 %s767_s27, %s839_s30  ;;  %p191_p0 = scmp.ne.s32.totalorder %s763_s26, %s759_s25 }
   0x8   : > { %p179_p1 = scmp.eq.s32.totalorder %s178_s9, 0  ;;  %p192_p2 = scmp.eq.s32.totalorder %s835_s28, 2 }
   0x9   : > { %p197_p3 = scmp.ne.s32.totalorder %s759_s25, %s755_s24  ;;  %p198_p4 = scmp.eq.s32.totalorder %s547_s29, 2 }
   0xa   : > { %s850_s10 = scalar_select %p179_p1, %s763_s26, %s181_s8  }
   0xb   : > { %p852_p5 = por %p192_p2, %p191_p0  ;;  %p856_p6 = por %p198_p4, %p197_p3 }
   0xc   : > { %p548_p7 = scmp.ge.s32.totalorder %s767_s27, 1  ;;  %p205_p8 = scmp.lt.s32.totalorder %s767_s27, 4 }
   0xd   : > { %p583_p9 = scmp.eq.s32.totalorder %s835_s28, 0  ;;  %s222_s16 = sshll.u32 %s942_s3, 4  ;;  %s223_s16 = int_to_ptr.hbm [resolvable:$true] %s222_s16 }
   0xe   : > { %p863_p10 = pnand %p548_p7, %p205_p8  ;;  %s769_s17 = smov [#allocation2]  }
   0xf   : > { %s224_s18 = sshll.u32 %s769_s17, 4  ;;  %s239_s21 = sshll.u32 %s944_s5, 4  ;;  %s225_s18 = int_to_ptr.vmem [resolvable:$true] %s224_s18  ;;  %s240_s21 = int_to_ptr.hbm [resolvable:$true] %s239_s21 }
  0x10   : > { %p572_p11 = pneg %p863_p10  ;;  %s770_s22 = smov 128  }
  0x11   : > { %s771_s23 = smov 8   ;;  %s772_s29 = smov [#allocation5]  }
  0x12   : > { %p573_p12 = pnand %p583_p9, %p572_p11  ;;  %s241_s8 = sshll.u32 %s772_s29, 4  ;;  %s242_s8 = int_to_ptr.vmem [resolvable:$true] %s241_s8 }
  0x13   : > { %267 = sbr.rel (%p863_p10) target bundleno = 567 (0x237), region = 48 }
  0x14   : > { %575 = dma.hbm_to_vmem [thread:$0]  (!%p573_p12), %s223_s16, 4096, %s225_s18, [#allocation3], %s770_s22, %s770_s22, %s771_s23  }
  0x15   : > { %578 = dma.hbm_to_vmem [thread:$0]  (!%p573_p12), %s240_s21, 2048, %s242_s8, [#allocation6], %s770_s22, %s770_s22, %s771_s23  }
  0x18   : > { %742 = dma.done.wait (%p583_p9), [#allocation3], 4096  }
  0x19   : > { %744 = vsyncadd (%p583_p9), [#allocation3], 4294963200 }
  0x1a   : > { %746 = dma.done.wait (%p583_p9), [#allocation6], 2048  }
  0x1b   : > { %748 = vsyncadd (%p583_p9), [#allocation6], 4294965248  ;;  %p304_p13 = scmp.lt.s32.totalorder %s835_s28, 2  ;;  %v773_v0 = vmov 0   ;;  %v340_v2 = vld [vmem:[#allocation2 + $0x78] sm:$0xff]  ;;  %v339_v3 = vld [vmem:[#allocation2 + $0x70] sm:$0xff] }
  0x1c   : > { %625 = vset.pattern.permute.xlu0 %v773_v0  ;;  %345 = vmatpush.msra.mxu0 %v340_v2  ;;  %v338_v4 = vld [vmem:[#allocation2 + $0x68] sm:$0xff]  ;;  %v337_v5 = vld [vmem:[#allocation2 + $0x60] sm:$0xff]  ;;  %v336_v6 = vld [vmem:[#allocation2 + $0x58] sm:$0xff]  ;;  %s301_s8 = sand.u32 1, %s759_s25   ;;  %s717_s14 = scalar_lea.hbm %s946_s7, 24 }
  0x1d   : > { %s305_s9 = scalar_select %p304_p13, %s835_s28, 2  ;;  %v335_v7 = vld [vmem:[#allocation2 + $0x50] sm:$0xff]  ;;  %v334_v8 = vld [vmem:[#allocation2 + $0x48] sm:$0xff]  ;;  %v333_v9 = vld [vmem:[#allocation2 + $0x40] sm:$0xff] }
  0x1e   : > { %346 = vmatpush.msra.mxu0 %v339_v3  ;;  %v332_v10 = vld [vmem:[#allocation2 + $0x38] sm:$0xff]  ;;  %v331_v11 = vld [vmem:[#allocation2 + $0x30] sm:$0xff]  ;;  %v330_v12 = vld [vmem:[#allocation2 + $0x28] sm:$0xff]  ;;  %s451_s22 = scalar_lea.sflag [#allocation4], %s301_s8 }
  0x1f   : > { %s556_s13 = sshll.u32 %s305_s9, 3  ;;  %v329_v13 = vld [vmem:[#allocation2 + $0x20] sm:$0xff]  ;;  %v328_v14 = vld [vmem:[#allocation2 + $0x18] sm:$0xff]  ;;  %v327_v15 = vld [vmem:[#allocation2 + $0x10] sm:$0xff]  ;;  %s555_s9 = sshll.u32 %s301_s8, 3 }
  0x20   : > { %s307_s16 = scalar_lea.vmem %s939_s0, %s556_s13  ;;  %347 = vmatpush.msra.mxu0 %v338_v4  ;;  %v326_v16 = vld [vmem:[#allocation2 + $0x8] sm:$0xff]  ;;  %v325_v17 = vld [vmem:[#allocation2] sm:$0xff]  ;;  %v382_v18 = vld [vmem:[#allocation2 + $0xf8] sm:$0xff]  ;;  %s559_s13 = sshll.u32 %s835_s28, 3 }
  0x21   : > { %v308_v1 = vld [vmem:[%s307_s16] sm:$0xff]  ;;  %v381_v19 = vld [vmem:[#allocation2 + $0xf0] sm:$0xff]  ;;  %388 = vmatpush.msra.mxu1 %v382_v18  ;;  %v380_v20 = vld [vmem:[#allocation2 + $0xe8] sm:$0xff]  ;;  %s461_s16 = scalar_lea.hbm %s946_s7, %s559_s13  ;;  %s303_s19 = scalar_lea.vmem [#allocation7], %s555_s9 }
  0x22   : > { %312 = vperm.xlu0 %625, %v308_v1   ;;  %348 = vmatpush.msra.mxu0 %v337_v5  ;;  %v379_v21 = vld [vmem:[#allocation2 + $0xe0] sm:$0xff]  ;;  %v378_v22 = vld [vmem:[#allocation2 + $0xd8] sm:$0xff]  ;;  %v377_v23 = vld [vmem:[#allocation2 + $0xd0] sm:$0xff]  ;;  %s463_s20 = sshll.u32 %s303_s19, 4  ;;  %s465_s21 = sshll.u32 %s461_s16, 4  ;;  %s464_s20 = int_to_ptr.vmem [resolvable:$true] %s463_s20  ;;  %s466_s21 = int_to_ptr.hbm [resolvable:$true] %s465_s21 }
  0x23   : > { %389 = vmatpush.msra.mxu1 %v381_v19  ;;  %v376_v24 = vld [vmem:[#allocation2 + $0xc8] sm:$0xff]  ;;  %v375_v25 = vld [vmem:[#allocation2 + $0xc0] sm:$0xff]  ;;  %v374_v26 = vld [vmem:[#allocation2 + $0xb8] sm:$0xff]  ;;  %s711_s23 = sshra.s32 %s466_s21, 4  ;;  %s712_s23 = int_to_ptr.hbm [resolvable:$true] %s711_s23 }
  0x24   : > { %349 = vmatpush.msra.mxu0 %v336_v6  ;;  %v373_v27 = vld [vmem:[#allocation2 + $0xb0] sm:$0xff]  ;;  %v626_v28 = vld [vmem:[%s940_s1] ss:$0 sm:$0xff]  ;;  %v372_v29 = vld [vmem:[#allocation2 + $0xa8] sm:$0xff]  ;;  %s713_s28 = scalar_lea.hbm %s712_s23, 8  ;;  %p718_p3 = scmp.lt.s32.totalorder %s712_s23, %s946_s7 }
  0x25   : > { %390 = vmatpush.msra.mxu1 %v380_v20  ;;  %v627_v30 = vld [vmem:[%s941_s2] ss:$0 sm:$0xff]  ;;  %v370_v36 = vld [vmem:[#allocation2 + $0x98] sm:$0xff]  ;;  %v369_v37 = vld [vmem:[#allocation2 + $0x90] sm:$0xff]  ;;  %p714_p0 = scmp.ne.s32.totalorder %s712_s23, %s713_s28  ;;  %p719_p4 = scmp.lt.s32.totalorder %s717_s14, %s713_s28 }
  0x26   : > { %350 = vmatpush.msra.mxu0 %v335_v7  ;;  %v371_v35 = vld [vmem:[#allocation2 + $0xa0] sm:$0xff]  ;;  %v368_v38 = vld [vmem:[#allocation2 + $0x88] sm:$0xff]  ;;  %v424_v40 = vld [vmem:[#allocation5 + $0x78] sm:$0xff] }
  0x27   : > { %391 = vmatpush.msra.mxu1 %v379_v21  ;;  %v367_v39 = vld [vmem:[#allocation2 + $0x80] sm:$0xff]  ;;  %v423_v41 = vld [vmem:[#allocation5 + $0x70] sm:$0xff]  ;;  %429 = vmatpush.msra.mxu2 %v424_v40  ;;  %v422_v42 = vld [vmem:[#allocation5 + $0x68] sm:$0xff]  ;;  %p715_p1 = pnand %p714_p0, %p852_p5  ;;  %p720_p7 = por %p719_p4, %p718_p3 }
  0x28   : > { %351 = vmatpush.msra.mxu0 %v334_v8  ;;  %v421_v43 = vld [vmem:[#allocation5 + $0x60] sm:$0xff]  ;;  %v420_v44 = vld [vmem:[#allocation5 + $0x58] sm:$0xff]  ;;  %v419_v45 = vld [vmem:[#allocation5 + $0x50] sm:$0xff] }
  0x29   : > { %392 = vmatpush.msra.mxu1 %v378_v22  ;;  %430 = vmatpush.msra.mxu2 %v423_v41  ;;  %v418_v46 = vld [vmem:[#allocation5 + $0x48] sm:$0xff]  ;;  %v417_v47 = vld [vmem:[#allocation5 + $0x40] sm:$0xff]  ;;  %v416_v48 = vld [vmem:[#allocation5 + $0x38] sm:$0xff]  ;;  %p716_p2 = pneg %p715_p1 }
  0x2a   : > { %352 = vmatpush.msra.mxu0 %v333_v9  ;;  %v415_v49 = vld [vmem:[#allocation5 + $0x30] sm:$0xff]  ;;  %v414_v50 = vld [vmem:[#allocation5 + $0x28] sm:$0xff]  ;;  %v628_v51 = vld [vmem:[%s943_s4] ss:$0 sm:$0xff] }
  0x2b   : > { %393 = vmatpush.msra.mxu1 %v377_v23  ;;  %431 = vmatpush.msra.mxu2 %v422_v42  ;;  %v413_v55 = vld [vmem:[#allocation5 + $0x20] sm:$0xff]  ;;  %v412_v56 = vld [vmem:[#allocation5 + $0x18] sm:$0xff]  ;;  %v411_v57 = vld [vmem:[#allocation5 + $0x10] sm:$0xff]  ;;  %p721_p8 = pnand %p720_p7, %p716_p2 }
  0x2c   : > { %353 = vmatpush.msra.mxu0 %v332_v10  ;;  %v410_v58 = vld [vmem:[#allocation5 + $0x8] sm:$0xff]  ;;  %v409_v59 = vld [vmem:[#allocation5] sm:$0xff] }
  0x2d   : > { %394 = vmatpush.msra.mxu1 %v376_v24  ;;  %432 = vmatpush.msra.mxu2 %v421_v43  ;;  %v629_v60 = vld [vmem:[%s943_s4 + $0x1] ss:$0 sm:$0xff]  ;;  %v630_v0 = vld [vmem:[%s945_s6] ss:$0 sm:$0xff] }
  0x2e   : > { %354 = vmatpush.msra.mxu0 %v331_v11 }
  0x2f   : > { %395 = vmatpush.msra.mxu1 %v375_v25  ;;  %433 = vmatpush.msra.mxu2 %v420_v44 }
  0x30   : > { %355 = vmatpush.msra.mxu0 %v330_v12 }
  0x31   : > { %396 = vmatpush.msra.mxu1 %v374_v26  ;;  %434 = vmatpush.msra.mxu2 %v419_v45 }
  0x32   : > { %356 = vmatpush.msra.mxu0 %v329_v13 }
  0x33   : > { %397 = vmatpush.msra.mxu1 %v373_v27  ;;  %435 = vmatpush.msra.mxu2 %v418_v46 }
  0x34   : > { %357 = vmatpush.msra.mxu0 %v328_v14 }
  0x35   : > { %398 = vmatpush.msra.mxu1 %v372_v29  ;;  %436 = vmatpush.msra.mxu2 %v417_v47 }
  0x36   : > { %358 = vmatpush.msra.mxu0 %v327_v15 }
  0x37   : > { %399 = vmatpush.msra.mxu1 %v371_v35  ;;  %437 = vmatpush.msra.mxu2 %v416_v48 }
  0x38   : > { %359 = vmatpush.msra.mxu0 %v326_v16 }
  0x39   : > { %400 = vmatpush.msra.mxu1 %v370_v36  ;;  %438 = vmatpush.msra.mxu2 %v415_v49 }
  0x3a   : > { %360 = vmatpush.msra.mxu0 %v325_v17 }
  0x3b   : > { %401 = vmatpush.msra.mxu1 %v369_v37  ;;  %439 = vmatpush.msra.mxu2 %v414_v50 }
  0x3d   : > { %402 = vmatpush.msra.mxu1 %v368_v38  ;;  %440 = vmatpush.msra.mxu2 %v413_v55 }
  0x3f   : > { %403 = vmatpush.msra.mxu1 %v367_v39  ;;  %441 = vmatpush.msra.mxu2 %v412_v56 }
  0x41   : > { %442 = vmatpush.msra.mxu2 %v411_v57 }
  0x43   : > { %443 = vmatpush.msra.mxu2 %v410_v58 }
  0x45   : > { %444 = vmatpush.msra.mxu2 %v409_v59 }
  0x94   : > { %v313_v31 = vpop.permute.xlu0 %312 }
  0x95   : > { %v318_v32 = vmul.f32 %v626_v28, %v313_v31 }
  0x97   : > { %v323_v33 = vadd.f32 %v627_v30, %v318_v32 }
  0x99   : > { %631 = vtanh.f32 %v323_v33 }
  0x9f   : > { %v632_v34 = vpop.eup %631 }
  0xa0   : > { %361 = vmatmul.f32.vlgmr.msra.gmra.mxu0 %v632_v34 }
 0x11d   : > { %v362_v52 = vpop.f32.mrf.mxu0 }
 0x11e   : > { %v363_v53 = vadd.f32 %v628_v51, %v362_v52 }
 0x120   : > { %633 = vtanh.f32 %v363_v53 }
 0x126   : > { %v634_v54 = vpop.eup %633 }
 0x127   : > { %404 = vmatmul.f32.vlgmr.msra.gmra.mxu1 %v634_v54 }
 0x1a4   : > { %v405_v61 = vpop.f32.mrf.mxu1 }
 0x1a5   : > { %v406_v62 = vadd.f32 %v629_v60, %v405_v61 }
 0x1a7   : > { %635 = vtanh.f32 %v406_v62 }
 0x1ad   : > { %v636_v63 = vpop.eup %635 }
 0x1ae   : > { %445 = vmatmul.f32.vlgmr.msra.gmra.mxu2 %v636_v63 }
 0x231   : > { %v446_v1 = vpop.f32.mrf.mxu2 }
 0x232   : > { %v447_v2 = vadd.f32 %v630_v0, %v446_v1 }
 0x234   : > { %449 = vst [vmem:[%s303_s19] sm:$0xff] %v447_v2 }
 0x235   : > { %724 = shalt.err (!%p721_p8)
}
 0x236   : > { %570 = dma.vmem_to_hbm [thread:$0]  (%p852_p5), %s464_s20, 128, %s466_s21, %s451_s22  }
 0x237 PF: > { %p587_p9 = scmp.ge.s32.totalorder %s767_s27, 2  ;;  %s477_s8 = sand.u32 1, %s755_s24  }
 0x238   : > { %s478_s16 = scalar_lea.sflag [#allocation4], %s477_s8 }
 0x239   : > { %p580_p10 = pnand %p587_p9, %p856_p6 }
 0x23b   : > { %p581_p11 = pneg %p580_p10 }
 0x23d   : > { %750 = dma.done.wait (%p581_p11), %s478_s16, 128  }
 0x23e   : > { %752 = vsyncadd (%p581_p11), %s478_s16, 4294967168  ;;  %p19_p12 = scmp.ge.s32.totalorder %s839_s30, 5   ;;  %s950_s24 = smov %s759_s25 }
 0x23f   : > { %s951_s25 = smov %s763_s26  ;;  %s952_s26 = smov %s850_s10 }
 0x240   : > { %s953_s27 = smov %s839_s30  ;;  %21 = sbr.rel (!%p19_p12) target bundleno = 5 (0x5), region = 94 }
 0x245   :  { %484 = vsyncpa [#allocation3], 1 }
 0x246   :  { %486 = vsyncpa [#allocation3 + $0x1], 1 }
 0x247   :  { %487 = vsyncpa [#allocation6], 1 }
 0x248   :  { %488 = vsyncpa [#allocation4], 1 }
 0x249   :  { %490 = vsyncpa [#allocation4 + $0x1], 1 }

</bundles_post_ra>
